<compile_context>
chip_gen: v7x
topology: tpu7x:2x2x1
jax: 0.10.0
libtpu: 0.0.40
codegen_flags: <defaults>
</compile_context>

<pallas_src>
import functools

import jax
import jax.numpy as jnp
from jax.experimental import pallas as pl
from jax.experimental.pallas import tpu as pltpu


def _round_up(a, m):
    return ((a + m - 1) // m) * m


def _vmem_capacity_bytes():
    """Physical VMEM per TensorCore; conservative (64 MiB) fallback if query fails."""
    try:
        cap = int(pltpu.get_tpu_info().vmem_capacity_bytes)
        if cap > 0:
            return cap
    except Exception:
        pass
    return 64 * 1024 * 1024


def _rbf_val_kernel(x_ref, xn_ref, pT_ref, pn_ref, val_ref, *, beta, precision):
    # x_ref: (TB, dim), xn_ref: (TB, 1), pT_ref: (dim, TN), pn_ref: (1, TN)
    x = x_ref[...].astype(jnp.float32)
    pT = pT_ref[...].astype(jnp.float32)
    x_norm = xn_ref[...].astype(jnp.float32)          # precomputed in wrapper
    p_norm = pn_ref[...].astype(jnp.float32)          # precomputed in wrapper
    xp = jnp.dot(x, pT, preferred_element_type=jnp.float32, precision=precision)  # MXU
    d2 = jnp.maximum(x_norm + p_norm - 2.0 * xp, 0.0)
    val_ref[...] = jnp.exp(-beta * d2).astype(val_ref.dtype)


def _rbf_val_jac_kernel(x_ref, xn_ref, pT_ref, pn_ref, val_ref, jac_ref, *,
                        beta, precision):
    # jac_ref: (TB, dim, TN) -- lane-dense in the points axis.
    x = x_ref[...].astype(jnp.float32)
    pT = pT_ref[...].astype(jnp.float32)
    x_norm = xn_ref[...].astype(jnp.float32)
    p_norm = pn_ref[...].astype(jnp.float32)
    xp = jnp.dot(x, pT, preferred_element_type=jnp.float32, precision=precision)
    d2 = jnp.maximum(x_norm + p_norm - 2.0 * xp, 0.0)
    val = jnp.exp(-beta * d2)                          # (TB, TN)
    val_ref[...] = val.astype(val_ref.dtype)
    t1 = (-2.0 * beta) * val                           # (TB, TN)
    t1b = t1[:, None, :]                               # (TB, 1, TN)
    dim = x.shape[1]
    # Write J[b, d, n] = t1[b, n] * (x[b, d] - pT[d, n]) in 8-row (sublane-aligned)
    # dim-chunks: small live temporaries, dense sublane+lane stores, no giant
    # (TB, dim, TN) broadcast materialization.
    for d0 in range(0, dim, 8):
        d1 = min(d0 + 8, dim)
        xs = x[:, d0:d1]                               # (TB, c)
        ps = pT[d0:d1, :]                              # (c, TN)
        jac_ref[:, d0:d1, :] = (
            t1b * (xs[:, :, None] - ps[None, :, :])
        ).astype(jac_ref.dtype)


class RBF:
    """JAX/Pallas port of stochman.nnj.RBF (forward pass)."""

    def __init__(self, dim, num_points, points=None, beta=1.0, key=None):
        if points is None:
            if key is None:
                key = jax.random.PRNGKey(42)
            self.points = jax.random.normal(key, (num_points, dim), dtype=jnp.float32)
        else:
            self.points = jnp.asarray(points, dtype=jnp.float32)
        if not isinstance(beta, (float, int)):
            # TODO(synk): tensor-valued (per-point) beta not implemented; float only.
            raise ValueError("Only float beta supported in this synthetic port")
        self.beta = float(beta)
        self.dim = dim
        self.num_points = num_points
        # Constants hoisted out of the grid loop (computed once, reused every call):
        self._pT = jnp.transpose(self.points)                               # (dim, N)
        self._p_norm = jnp.sum(self.points * self.points, axis=1)[None, :]  # (1, N)

    def __call__(self, x, jacobian=False, *, block_b=None, block_n=None,
                 val_dtype=jnp.float32, jac_dtype=jnp.float32,
                 jac_layout="bnd", precision=jax.lax.Precision.HIGHEST):
        B, dim = x.shape
        assert dim == self.dim
        N = self.num_points

        # --- chip-aware VMEM policy ---
        cap = _vmem_capacity_bytes()
        if cap >= 100 * 1024 * 1024:          # v5e / v6e class: 128 MiB VMEM
            budget = 80 * 1024 * 1024
            vmem_limit = 96 * 1024 * 1024
            jac_bn_default = 512
        else:                                 # v7x class: 64 MiB per TensorCore
            budget = 44 * 1024 * 1024
            vmem_limit = 56 * 1024 * 1024
            jac_bn_default = 256

        if jacobian:
            bb = int(block_b) if block_b is not None else 256
            bn = int(block_n) if block_n is not None else jac_bn_default
            chunk = min(8, dim)

            def est(tb, tn):
                jac_blk = tb * dim * tn * 4
                io = 2 * (jac_blk + tb * tn * 4 + tb * dim * 4
                          + dim * tn * 4 + tn * 4 + tb * 4)       # double-buffered
                temps = (6 * tb * tn + 2 * tb * chunk * tn) * 4   # in-kernel values
                return io + temps

            while est(bb, bn) > budget and bn > 128:
                bn //= 2
            while est(bb, bn) > budget and bb > 8:
                bb //= 2
        else:
            # Val-only path is a tiny f32 tile; 512x512 sits near the store roofline.
            bb = int(block_b) if block_b is not None else 512
            bn = int(block_n) if block_n is not None else 512

        # Align tiles to the (8, 128) sublane/lane quanta; pad ragged extents.
        bb = _round_up(B, 8) if B <= bb else _round_up(bb, 8)
        B_pad = _round_up(B, bb)
        if N <= bn:
            bn = N if N < 128 else _round_up(N, 128)
        else:
            bn = _round_up(bn, 128)
        N_pad = _round_up(N, bn)

        # Guarantee >=2 grid steps along a 'parallel' axis when splittable, so a
        # 2-TensorCore chip (v7x) doesn't leave one core idle on moderate sizes.
        if (B_pad // bb) * (N_pad // bn) < 2:
            half_b, half_n = bb // 2, bn // 2
            if half_b >= 8 and half_b % 8 == 0 and B_pad % half_b == 0 \
                    and B_pad // half_b >= 2:
                bb = half_b
            elif half_n >= 128 and half_n % 128 == 0 and N_pad % half_n == 0 \
                    and N_pad // half_n >= 2:
                bn = half_n

        x_p = x if B_pad == B else jnp.pad(x, ((0, B_pad - B), (0, 0)))
        xn_p = jnp.sum(x_p * x_p, axis=1, keepdims=True)          # (B_pad, 1) hoisted
        pT_p = self._pT if N_pad == N else jnp.pad(self._pT, ((0, 0), (0, N_pad - N)))
        pn_p = self._p_norm if N_pad == N else jnp.pad(self._p_norm,
                                                       ((0, 0), (0, N_pad - N)))

        grid = (B_pad // bb, N_pad // bn)
        x_spec = pl.BlockSpec((bb, dim), lambda i, j: (i, 0))
        xn_spec = pl.BlockSpec((bb, 1), lambda i, j: (i, 0))
        pT_spec = pl.BlockSpec((dim, bn), lambda i, j: (0, j))
        pn_spec = pl.BlockSpec((1, bn), lambda i, j: (0, j))
        val_spec = pl.BlockSpec((bb, bn), lambda i, j: (i, j))
        cparams = pltpu.CompilerParams(
            dimension_semantics=("parallel", "parallel"),
            vmem_limit_bytes=vmem_limit,
        )

        if not jacobian:
            val = pl.pallas_call(
                functools.partial(_rbf_val_kernel, beta=self.beta, precision=precision),
                out_shape=jax.ShapeDtypeStruct((B_pad, N_pad), val_dtype),
                grid=grid,
                in_specs=[x_spec, xn_spec, pT_spec, pn_spec],
                out_specs=val_spec,
                compiler_params=cparams,
            )(x_p, xn_p, pT_p, pn_p)
            return val[:B, :N]

        jac_spec = pl.BlockSpec((bb, dim, bn), lambda i, j: (i, 0, j))
        val, jac_bdn = pl.pallas_call(
            functools.partial(_rbf_val_jac_kernel, beta=self.beta, precision=precision),
            out_shape=(
                jax.ShapeDtypeStruct((B_pad, N_pad), val_dtype),
                jax.ShapeDtypeStruct((B_pad, dim, N_pad), jac_dtype),
            ),
            grid=grid,
            in_specs=[x_spec, xn_spec, pT_spec, pn_spec],
            out_specs=(val_spec, jac_spec),
            compiler_params=cparams,
        )(x_p, xn_p, pT_p, pn_p)
        val = val[:B, :N]
        jac_bdn = jac_bdn[:B, :, :N]
        if jac_layout == "bdn":
            # Fast path: hand the lane-dense kernel layout (B, dim, N) to the caller;
            # no extra read+write pass over the largest array.
            return val, jac_bdn
        # Module-compatible JacType.FULL layout (B, N, dim).  This is pure layout
        # plumbing (one XLA transpose pass); use jac_layout="bdn" to skip it.
        return val, jnp.transpose(jac_bdn, (0, 2, 1))


def _ref_forward(x, points, beta):
    x_norm = jnp.sum(x ** 2, axis=1).reshape(-1, 1)
    p_norm = jnp.sum(points ** 2, axis=1).reshape(1, -1)
    xp = jnp.dot(x, points.T, precision=jax.lax.Precision.HIGHEST)
    d2 = jnp.maximum(x_norm + p_norm - 2.0 * xp, 0.0)
    val = jnp.exp(-beta * d2)
    t1 = -2.0 * beta * val
    jac = t1[:, :, None] * (x[:, None, :] - points[None, :, :])
    return val, jac


if __name__ == "__main__":
    key = jax.random.PRNGKey(0)
    kx, kp, kx2, kp2 = jax.random.split(key, 4)

    # --- small case (module-sized shapes) ---
    B, dim, num_points = 8, 32, 16
    x = jax.random.normal(kx, (B, dim), dtype=jnp.float32)
    rbf = RBF(dim=dim, num_points=num_points, beta=1.0, key=kp)

    val = jax.block_until_ready(rbf(x))                       # forward only
    val_j, jac = rbf(x, jacobian=True)                        # default (B, N, dim)
    jac = jax.block_until_ready(jac)
    val_f, jac_f = rbf(x, jacobian=True, jac_layout="bdn")    # fast (B, dim, N)
    jac_f = jax.block_until_ready(jac_f)

    val_ref, jac_ref = _ref_forward(x, rbf.points, rbf.beta)
    assert jnp.allclose(val, val_ref, atol=2e-4, rtol=2e-4)
    assert jnp.allclose(val_j, val_ref, atol=2e-4, rtol=2e-4)
    assert jnp.allclose(jac, jac_ref, atol=2e-4, rtol=2e-4)
    assert jnp.allclose(val_f, val_ref, atol=2e-4, rtol=2e-4)
    assert jnp.allclose(jac_f, jnp.transpose(jac_ref, (0, 2, 1)), atol=2e-4, rtol=2e-4)

    # --- medium case: exercises 2-D tiling, VMEM policy, ragged padding ---
    B2, dim2, num_points2 = 264, 32, 130
    x2 = jax.random.normal(kx2, (B2, dim2), dtype=jnp.float32)
    rbf2 = RBF(dim=dim2, num_points=num_points2, beta=0.5, key=kp2)
    val2, jac2 = rbf2(x2, jacobian=True)
    jac2 = jax.block_until_ready(jac2)
    val2_ref, jac2_ref = _ref_forward(x2, rbf2.points, rbf2.beta)
    assert jnp.allclose(val2, val2_ref, atol=2e-4, rtol=2e-4)
    assert jnp.allclose(jac2, jac2_ref, atol=2e-4, rtol=2e-4)

    print("KERNEL_OK")
</pallas_src>

<mosaic_0001>
module attributes {stable_mosaic.version = 11 : i64} {
  func.func @_rbf_val_kernel(%arg0: i32, %arg1: i32, %arg2: memref<8x32xf32, #tpu.memory_space<vmem>>, %arg3: memref<8x1xf32, #tpu.memory_space<vmem>>, %arg4: memref<32x16xf32, #tpu.memory_space<vmem>>, %arg5: memref<1x16xf32, #tpu.memory_space<vmem>>, %arg6: memref<8x16xf32, #tpu.memory_space<vmem>>) attributes {dimension_semantics = [#tpu.dimension_semantics<parallel>, #tpu.dimension_semantics<parallel>], iteration_bounds = array<i64: 1, 1>, scalar_prefetch = 0 : i64, scratch_operands = 0 : i64, tpu.core_type = #tpu.core_type<tc>, window_params = [{transform_indices = @transform_0, window_bounds = array<i64: 8, 32>}, {transform_indices = @transform_1, window_bounds = array<i64: 8, 1>}, {transform_indices = @transform_2, window_bounds = array<i64: 32, 16>}, {transform_indices = @transform_3, window_bounds = array<i64: 1, 16>}, {transform_indices = @transform_4, window_bounds = array<i64: 8, 16>}]} {
    %c0 = arith.constant 0 : index
    %c0_0 = arith.constant 0 : index
    %0 = vector.load %arg2[%c0, %c0_0] : memref<8x32xf32, #tpu.memory_space<vmem>>, vector<8x32xf32>
    %c0_1 = arith.constant 0 : index
    %c0_2 = arith.constant 0 : index
    %1 = vector.load %arg4[%c0_1, %c0_2] : memref<32x16xf32, #tpu.memory_space<vmem>>, vector<32x16xf32>
    %c0_3 = arith.constant 0 : index
    %c0_4 = arith.constant 0 : index
    %2 = vector.load %arg3[%c0_3, %c0_4] : memref<8x1xf32, #tpu.memory_space<vmem>>, vector<8x1xf32>
    %c0_5 = arith.constant 0 : index
    %c0_6 = arith.constant 0 : index
    %3 = vector.load %arg5[%c0_5, %c0_6] : memref<1x16xf32, #tpu.memory_space<vmem>>, vector<1x16xf32>
    %cst = arith.constant dense<0.000000e+00> : vector<8x16xf32>
    %4 = tpu.matmul %0, %1, %cst {dimension_numbers = #tpu.dot_dimension_numbers<[1], [0], [0], [1], [0, 0, 1, 1], [], []>, precision = #tpu.contract_precision<fp32>} : vector<8x32xf32>, vector<32x16xf32>, vector<8x16xf32> -> vector<8x16xf32>
    %5 = vector.broadcast %2 : vector<8x1xf32> to vector<8x16xf32>
    %6 = vector.broadcast %3 : vector<1x16xf32> to vector<8x16xf32>
    %7 = arith.addf %5, %6 : vector<8x16xf32>
    %cst_7 = arith.constant 2.000000e+00 : f32
    %8 = vector.broadcast %cst_7 : f32 to vector<8x16xf32>
    %9 = arith.mulf %8, %4 : vector<8x16xf32>
    %10 = arith.subf %7, %9 : vector<8x16xf32>
    %cst_8 = arith.constant 0.000000e+00 : f32
    %11 = vector.broadcast %cst_8 : f32 to vector<8x16xf32>
    %12 = arith.maximumf %10, %11 : vector<8x16xf32>
    %cst_9 = arith.constant -1.000000e+00 : f32
    %13 = vector.broadcast %cst_9 : f32 to vector<8x16xf32>
    %14 = arith.mulf %13, %12 : vector<8x16xf32>
    %15 = math.exp %14 : vector<8x16xf32>
    %c0_10 = arith.constant 0 : index
    %c0_11 = arith.constant 0 : index
    %16 = vector.load %arg6[%c0_10, %c0_11] : memref<8x16xf32, #tpu.memory_space<vmem>>, vector<8x16xf32>
    tpu.vector_store %arg6[%c0_10, %c0_11], %15 {strides = array<i32>} : memref<8x16xf32, #tpu.memory_space<vmem>>, vector<8x16xf32>,
    return
  }
  func.func @transform_0(%arg0: i32, %arg1: i32) -> (i32, i32) {
    %c0_i32 = arith.constant 0 : i32
    %c0_i32_0 = arith.constant 0 : i32
    return %arg0, %c0_i32 : i32, i32
  }
  func.func @transform_1(%arg0: i32, %arg1: i32) -> (i32, i32) {
    %c0_i32 = arith.constant 0 : i32
    %c0_i32_0 = arith.constant 0 : i32
    return %arg0, %c0_i32 : i32, i32
  }
  func.func @transform_2(%arg0: i32, %arg1: i32) -> (i32, i32) {
    %c0_i32 = arith.constant 0 : i32
    %c0_i32_0 = arith.constant 0 : i32
    return %c0_i32, %arg1 : i32, i32
  }
  func.func @transform_3(%arg0: i32, %arg1: i32) -> (i32, i32) {
    %c0_i32 = arith.constant 0 : i32
    %c0_i32_0 = arith.constant 0 : i32
    return %c0_i32, %arg1 : i32, i32
  }
  func.func @transform_4(%arg0: i32, %arg1: i32) -> (i32, i32) {
    %c0_i32 = arith.constant 0 : i32
    return %arg0, %arg1 : i32, i32
  }
}

</mosaic_0001>

<bundles_post_ra>
// kernel: tpu_custom_call.1
= control target key start
LH: loop header
LB: loop body
LE: loop exit
PB: predicated region body
PF: predicated region fallthrough
CT: control target
= control target key end

     0   :  { %v722_v3 = vmov 0.0|0.0   ;;  %vm25_vm0 = vcmask 261120   ;;  %vm723_vm1 = vmmov 0   ;;  %v724_v10 = vmov 0.0   ;;  %s809_s0 = inlined_call_operand.vmem [shape: f32[8,32], index: 0, kind: input, shape index: {}]   ;;  %s810_s1 = inlined_call_operand.vmem [shape: f32[8,1], index: 1, kind: input, shape index: {}]   ;;  %s811_s2 = inlined_call_operand.vmem [shape: f32[32,16], index: 2, kind: input, shape index: {}]   ;;  %s812_s3 = inlined_call_operand.vmem [shape: f32[1,16], index: 3, kind: input, shape index: {}]   ;;  %s813_s4 = inlined_call_operand.hbm [shape: f32[8,16], index: 4, kind: output, shape index: {}]  }
   0x1   :  { %v19_v0 = vld [vmem:[%s811_s2] sm:$0xff]  ;;  %v20_v1 = vld [vmem:[%s811_s2 + $0x8] sm:$0xff]  ;;  %v21_v2 = vld [vmem:[%s811_s2 + $0x10] sm:$0xff]  ;;  %645 = vmatprep.subr.bf16.mxu1 %v722_v3  ;;  %663 = vmatprep.subr.bf16.mxu0 %v722_v3 }
   0x2   :  { %v30_v4 = vand.u32 4294901760, %v19_v0  ;;  %v33_v5 = vand.u32 4294901760, %v20_v1  ;;  %v22_v6 = vld [vmem:[%s811_s2 + $0x18] sm:$0xff]  ;;  %v36_v7 = vand.u32 4294901760, %v21_v2  ;;  %v18_v8 = vld [vmem:[%s809_s0] sm:$0xff]  ;;  %587 = vmatprep.mubr.msk.f32.mxu1 %vm723_vm1, %v724_v10  ;;  %620 = vmatprep.mubr.msk.f32.mxu0 %vm723_vm1, %v724_v10 }
   0x3   :  { %v39_v9 = vand.u32 4294901760, %v22_v6  ;;  %v27_v11 = vsel %vm25_vm0, %v18_v8, 0  ;;  %v23_v12 = vld [vmem:[%s810_s1] sm:$0xff] }
   0x4   :  { %9 = vsyncpa [#allocation3], 0  ;;  %v646_v13 = vpack.c.bf16 %v33_v5, %v30_v4  ;;  %v110_v14 = vsub.f32 %v19_v0, %v30_v4  ;;  %v117_v15 = vsub.f32 %v20_v1, %v33_v5  ;;  %v124_v16 = vsub.f32 %v21_v2, %v36_v7  ;;  %v548_v44 = vld [vmem:[%s812_s3] ss:$0 sm:$0xff]  ;;  %s726_s2 = smov [#allocation2]  }
   0x5   :  { %v725_v17 = vmov 0   ;;  %v131_v18 = vsub.f32 %v22_v6, %v39_v9  ;;  %v98_v19 = vand.u32 4294901760, %v27_v11  ;;  %v649_v20 = vpack.c.bf16 %v39_v9, %v36_v7  ;;  %s540_s27 = sshll.u32 %s726_s2, 4  ;;  %s541_s27 = int_to_ptr.vmem [resolvable:$true] %s540_s27 }
   0x6   :  { %695 = vset.pattern.permute.xlu0 %v725_v17  ;;  %647 = vmatpush3.bf16.msra.mxu1 %v646_v13  ;;  %v111_v21 = vand.u32 4294901760, %v110_v14  ;;  %v118_v22 = vand.u32 4294901760, %v117_v15  ;;  %v125_v23 = vand.u32 4294901760, %v124_v16  ;;  %v658_v41 = vpack.c.bf16 %v117_v15, %v110_v14  ;;  %s698_s28 = scalar_lea.vmem %s541_s27, 128  ;;  %p703_p1 = scmp.lt.s32.totalorder %s541_s27, %s541_s27 }
   0x7   :  { %516 = vperm.xlu0 %695, %v23_v12   ;;  %665 = vmatpush3.bf16.msra.mxu0 %v646_v13  ;;  %v99_v24 = vsub.f32 %v27_v11, %v98_v19  ;;  %v132_v25 = vand.u32 4294901760, %v131_v18  ;;  %v661_v42 = vpack.c.bf16 %v131_v18, %v124_v16  ;;  %vm532_vm2 = vcmask 130048   ;;  %p699_p0 = scmp.ne.s32.totalorder %s541_s27, %s698_s28  ;;  %p704_p2 = scmp.lt.s32.totalorder %s698_s28, %s698_s28 }
   0x8   :  { %648 = vmatprep.subr.bf16.mxu1 %v722_v3  ;;  %666 = vmatprep.subr.bf16.mxu0 %v722_v3  ;;  %v112_v26 = vsub.f32 %v110_v14, %v111_v21  ;;  %v119_v27 = vsub.f32 %v117_v15, %v118_v22  ;;  %v126_v28 = vsub.f32 %v124_v16, %v125_v23 }
   0x9   :  { %v100_v29 = vand.u32 4294901760, %v99_v24  ;;  %v133_v30 = vsub.f32 %v131_v18, %v132_v25  ;;  %v670_v33 = vpack.c.bf16 %v118_v22, %v111_v21  ;;  %v673_v39 = vpack.c.bf16 %v132_v25, %v125_v23  ;;  %p705_p3 = por %p704_p2, %p703_p1 }
   0xa   :  { %650 = vmatpush3.bf16.msra.mxu1 %v649_v20  ;;  %v113_v31 = vand.u32 4294901760, %v112_v26  ;;  %v120_v32 = vand.u32 4294901760, %v119_v27  ;;  %v127_v36 = vand.u32 4294901760, %v126_v28 }
   0xb   :  { %668 = vmatpush3.bf16.msra.mxu0 %v649_v20  ;;  %v101_v34 = vsub.f32 %v99_v24, %v100_v29  ;;  %651 = vmatprep.subr.bf16.mxu1 %v722_v3  ;;  %v134_v37 = vand.u32 4294901760, %v133_v30  ;;  %p706_p4 = pnand %p705_p3, %p699_p0 }
   0xc   :  { %669 = vmatprep.subr.bf16.mxu0 %v722_v3  ;;  %v652_v35 = vpack.c.bf16 %v120_v32, %v113_v31 }
   0xd   :  { %v102_v38 = vand.u32 4294901760, %v101_v34  ;;  %v655_v40 = vpack.c.bf16 %v134_v37, %v127_v36 }
   0xe   :  { %621 = vmatmul.mubr.f32.vlgmr.msra.gmra.mrb[0].mxu0 %v100_v29 }
   0xf   :  { %671 = vmatpush3.bf16.msra.mxu0 %v670_v33  ;;  %631 = vmatprep.mubr.msk.f32.mxu0 %vm723_vm1, %v724_v10 }
  0x10   :  { %588 = vmatmul.mubr.f32.vlgmr.msra.gmra.mrb[0].mxu1 %v102_v38  ;;  %672 = vmatprep.subr.bf16.mxu0 %v722_v3 }
  0x11   :  { %653 = vmatpush3.bf16.msra.mxu1 %v652_v35  ;;  %598 = vmatprep.mubr.msk.f32.mxu1 %vm723_vm1, %v724_v10 }
  0x12   :  { %654 = vmatprep.subr.bf16.mxu1 %v722_v3 }
  0x13   :  { %674 = vmatpush3.bf16.msra.mxu0 %v673_v39 }
  0x14   :  { %675 = vmatprep.subr.bf16.mxu0 %v722_v3 }
  0x15   :  { %656 = vmatpush3.bf16.msra.mxu1 %v655_v40 }
  0x16   :  { %657 = vmatprep.subr.bf16.mxu1 %v722_v3  ;;  %632 = vmatmul.mubr.f32.vlgmr.msra.gmra.mrb[0].mxu0 %v98_v19 }
  0x17   :  { %677 = vmatpush3.bf16.msra.mxu0 %v646_v13  ;;  %642 = vmatprep.mubr.msk.f32.mxu0 %vm723_vm1, %v724_v10 }
  0x18   :  { %599 = vmatmul.mubr.f32.vlgmr.msra.gmra.mrb[0].mxu1 %v98_v19  ;;  %678 = vmatprep.subr.bf16.mxu0 %v722_v3 }
  0x19   :  { %659 = vmatpush3.bf16.msra.mxu1 %v658_v41  ;;  %609 = vmatprep.mubr.msk.f32.mxu1 %vm723_vm1, %v724_v10 }
  0x1a   :  { %660 = vmatprep.subr.bf16.mxu1 %v722_v3 }
  0x1b   :  { %680 = vmatpush3.bf16.msra.mxu0 %v649_v20 }
  0x1d   :  { %662 = vmatpush3.bf16.msra.mxu1 %v661_v42 }
  0x1e   :  { %643 = vmatmul.mubr.f32.vlgmr.msra.gmra.mrb[0].mxu0 %v98_v19 }
  0x20   :  { %610 = vmatmul.mubr.f32.vlgmr.msra.gmra.mrb[0].mxu1 %v99_v24 }
  0x86   :  { %v517_v45 = vpop.permute.xlu0 %516 }
  0x87   :  { %v525_v50 = vadd.f32 %v548_v44, %v517_v45 }
  0xf1   :  { %v510_v43 = vpop.f32.mrb[0].mxu0 }
  0xf2   :  { %v644_v46 = vpop.f32.mrb[1].mxu0 }
  0xf3   :  { %v275_v47 = vpop.f32.mrb[0].mxu1 }
  0xf4   :  { %v681_v48 = vadd.f32 %v510_v43, %v275_v47  ;;  %v611_v49 = vpop.f32.mrb[1].mxu1 }
  0xf6   :  { %v526_v51 = vmul.f32 2.0, %v681_v48 }
  0xf8   :  { %v527_v52 = vsub.f32 %v525_v50, %v526_v51 }
  0xfa   :  { %v528_v53 = vmax.f32 %v527_v52, 0.0 }
  0xfc   :  { %v529_v54 = vmul.f32 -1.0, %v528_v53 }
  0xfe   :  { %v530_v55 = vmul.f32 1.442695, %v529_v54 }
 0x100   :  { %696 = vpow2.f32 %v530_v55 }
 0x10a   :  { %v697_v56 = vpop.eup %696 }
 0x10b   :  { %533 = vst.msk [vmem:[#allocation2] sm:$0xff] %vm532_vm2, %v697_v56 }
 0x10c   :  { %709 = shalt.err (!%p706_p4)
}
 0x10d   :  { %s710_s30 = scalar_lea.hbm %s813_s4, 128 }
 0x10e   :  { %p711_p5 = scmp.ne.s32.totalorder %s813_s4, %s710_s30  ;;  %p714_p6 = scmp.lt.u32.totalorder %s710_s30, %s813_s4 }
 0x110   :  { %p716_p7 = pnand %p714_p6, %p711_p5 }
 0x112   :  { %719 = shalt.err (!%p716_p7)
}
 0x113   :  { %543 = dma.vmem_to_hbm [thread:$0]  %s541_s27, 128, %s813_s4, [#allocation3]  }
 0x114   :  { %720 = dma.done.wait [#allocation3], 128  }
 0x115   :  { %721 = vsyncadd [#allocation3], 4294967168 }
 0x116   :  { %547 = vsyncpa [#allocation3], 1 }

</bundles_post_ra>
